<compile_context>
chip_gen: v6e
topology: v6e:2x2x1
jax: 0.10.0
libtpu: 0.0.40
codegen_flags: <defaults>
</compile_context>

<pallas_src>
import warnings

import jax
import jax.numpy as jnp
from jax.experimental import pallas as pl
from jax.experimental.pallas import tpu as pltpu

_TARGET_TILE_BYTES = 4 * 1024 * 1024          # ~4 MiB per tile (padded-lane accounting)
_VMEM_LIMIT_BYTES = 32 * 1024 * 1024          # safe on v5e / v6e / v7x
_LANE_CANDIDATES = (512, 256, 128)            # lane-dense widths (multiples of 128)


def _identity_kernel(x_ref, o_ref):
    # Elementwise passthrough of the current VMEM tile.
    o_ref[...] = x_ref[...]


def _round_up(v: int, m: int) -> int:
    return (v + m - 1) // m * m


def _round_down(v: int, m: int) -> int:
    return v // m * m


def _dimension_semantics():
    """Shard the row-tile axis across both TensorCores on v7x only."""
    try:
        kind = jax.devices()[0].device_kind.lower()
    except Exception:  # pragma: no cover - backend probing is best-effort
        kind = ""
    if "v7" in kind:
        return (pltpu.CORE_PARALLEL,)
    return ("parallel",)


_DIM_SEMANTICS = _dimension_semantics()


def _copy_2d(x2d: jax.Array) -> jax.Array:
    """Pipelined identity copy of a 2-D slab, tiled along rows only."""
    rows, lanes = x2d.shape
    itemsize = jnp.dtype(x2d.dtype).itemsize
    # Sublane multiple: 8 (32-bit), 16 (bf16/fp16), 32 (int8/fp8).
    sub = max(8, 32 // max(1, itemsize))
    # VMEM tile budget uses the lane-padded footprint.
    padded_lanes = _round_up(lanes, 128)
    target_rows = max(
        sub, _round_down(_TARGET_TILE_BYTES // (padded_lanes * itemsize), sub)
    )
    if rows <= target_rows:
        tile_rows = rows          # block rows == full array dim -> always legal
    else:
        tile_rows = target_rows   # multiple of `sub`; edge block is masked
    grid = pl.cdiv(rows, tile_rows)

    return pl.pallas_call(
        _identity_kernel,
        out_shape=jax.ShapeDtypeStruct((rows, lanes), x2d.dtype),
        grid_spec=pl.GridSpec(
            grid=(grid,),
            in_specs=[pl.BlockSpec((tile_rows, lanes), lambda i: (i, 0))],
            out_specs=pl.BlockSpec((tile_rows, lanes), lambda i: (i, 0)),
        ),
        compiler_params=pltpu.CompilerParams(
            dimension_semantics=_DIM_SEMANTICS,
            vmem_limit_bytes=_VMEM_LIMIT_BYTES,
        ),
        # Output HBM buffer aliases the kernel input buffer: no extra array.
        input_output_aliases={0: 0},
    )(x2d)


def _model_forward_impl(x: jax.Array) -> jax.Array:
    """Forward pass of the (base) Model: passthrough of the input tensor."""
    if x.ndim == 0 or x.size == 0:
        return x

    orig_shape = x.shape
    total = x.size

    # Fast path: lane-dense slab with zero padding / zero extra HBM passes.
    for lanes in _LANE_CANDIDATES:
        if total % lanes == 0:
            out = _copy_2d(x.reshape(total // lanes, lanes))
            return out.reshape(orig_shape)

    # Ragged fallback: no padded copy; tile leading dims only, the full-extent
    # last dim rides as the lane axis (legal because it equals the array dim).
    if x.ndim >= 2:
        out = _copy_2d(x.reshape(total // orig_shape[-1], orig_shape[-1]))
    else:
        out = _copy_2d(x.reshape(1, total))
    return out.reshape(orig_shape)


# jit with donation: the caller's buffer can be reused for the output, and the
# reshape -> pallas(alias) -> reshape chain resolves with no extra HBM arrays.
model_forward = jax.jit(_model_forward_impl, donate_argnums=0)


if __name__ == "__main__":
    # Donation-related warnings (if any) are informational only.
    warnings.filterwarnings("ignore", message="Some donated buffers were not usable")

    key = jax.random.PRNGKey(0)
    # Small shape consistent with the module's input_shape convention (NCHW).
    x = jax.random.normal(key, (2, 4, 16, 16), dtype=jnp.float32)
    expected = jax.device_get(x)  # host copy: x's device buffer is donated below

    y = model_forward(x)
    y = jax.block_until_ready(y)

    assert y.shape == expected.shape, (y.shape, expected.shape)
    assert y.dtype == jnp.float32, y.dtype
    assert bool(jnp.allclose(y, expected)), "identity passthrough mismatch"

    print("KERNEL_OK")
</pallas_src>

<mosaic_0001>
module attributes {stable_mosaic.version = 11 : i64} {
  func.func @_identity_kernel(%arg0: i32, %arg1: memref<4x512xf32, #tpu.memory_space<vmem>>, %arg2: memref<4x512xf32, #tpu.memory_space<vmem>>) attributes {dimension_semantics = [#tpu.dimension_semantics<parallel>], iteration_bounds = array<i64: 1>, scalar_prefetch = 0 : i64, scratch_operands = 0 : i64, tpu.core_type = #tpu.core_type<tc>, window_params = [{transform_indices = @transform_0, window_bounds = array<i64: 4, 512>}, {transform_indices = @transform_1, window_bounds = array<i64: 4, 512>}]} {
    %c0 = arith.constant 0 : index
    %c0_0 = arith.constant 0 : index
    %0 = vector.load %arg1[%c0, %c0_0] : memref<4x512xf32, #tpu.memory_space<vmem>>, vector<4x512xf32>
    %c0_1 = arith.constant 0 : index
    %c0_2 = arith.constant 0 : index
    %1 = vector.load %arg2[%c0_1, %c0_2] : memref<4x512xf32, #tpu.memory_space<vmem>>, vector<4x512xf32>
    tpu.vector_store %arg2[%c0_1, %c0_2], %0 {strides = array<i32>} : memref<4x512xf32, #tpu.memory_space<vmem>>, vector<4x512xf32>,
    return
  }
  func.func @transform_0(%arg0: i32) -> (i32, i32) {
    %c0_i32 = arith.constant 0 : i32
    %c0_i32_0 = arith.constant 0 : i32
    return %arg0, %c0_i32 : i32, i32
  }
  func.func @transform_1(%arg0: i32) -> (i32, i32) {
    %c0_i32 = arith.constant 0 : i32
    %c0_i32_0 = arith.constant 0 : i32
    return %arg0, %c0_i32 : i32, i32
  }
}

</mosaic_0001>

<bundles_post_ra>
// kernel: _model_forward_impl.1
= control target key start
LH: loop header
LB: loop body
LE: loop exit
PB: predicated region body
PF: predicated region fallthrough
CT: control target
= control target key end

     0   :  { %s38_s0 = inlined_call_operand.vmem [shape: f32[4,512], index: 0, kind: input, shape index: {}, may-alias: {0,1}]   ;;  %s39_s1 = inlined_call_operand.vmem [shape: f32[4,512], index: 1, kind: output, shape index: {}, may-alias: {0,1}]  }
   0x1   :  { %v8_v0 = vld [vmem:[%s38_s0] sm:$0xff]  ;;  %v9_v1 = vld [vmem:[%s38_s0 + $0x8] sm:$0xff] }
   0x2   :  { %10 = vst [vmem:[%s39_s1] sm:$0xff] %v8_v0  ;;  %11 = vst [vmem:[%s39_s1 + $0x8] sm:$0xff] %v9_v1 }

</bundles_post_ra>
